<compile_context>
chip_gen: v7x
topology: tpu7x:2x2x1
jax: 0.10.0
libtpu: 0.0.40
codegen_flags: <defaults>
</compile_context>

<pallas_src>
import jax
import jax.numpy as jnp
from jax.experimental import pallas as pl
from jax.experimental.pallas import tpu as pltpu


def _fusion_kernel(e_ref, i_ref, wt_ref, b_ref, o_ref):
    """One (col-tile n, row-tile m) grid step.

    e_ref, i_ref : [tm, d]     (resident across the column axis)
    wt_ref       : [2, d, tn]  (wt[0] multiplies e, wt[1] multiplies i)
    b_ref        : [1, tn]     (f32)
    o_ref        : [tm, tn]
    """
    d = e_ref.shape[-1]
    tn = o_ref.shape[-1]

    e_full = e_ref[...]
    i_full = i_ref[...]
    w1 = wt_ref[0]                       # [d, tn] view, zero-cost
    w2 = wt_ref[1]

    mxu_dtype = w1.dtype                 # wrapper controls MXU precision via weight dtype
    e_m = e_full if e_full.dtype == mxu_dtype else e_full.astype(mxu_dtype)
    i_m = i_full if i_full.dtype == mxu_dtype else i_full.astype(mxu_dtype)

    # Fused "concat + Linear": two MXU matmuls with f32 accumulation.
    z = (
        jnp.dot(e_m, w1, preferred_element_type=jnp.float32)
        + jnp.dot(i_m, w2, preferred_element_type=jnp.float32)
        + b_ref[...].astype(jnp.float32)
    )
    # sigmoid(z) = 1 / (1 + exp(-z)); exp and approx reciprocal both run on the EUP slot.
    att = pl.reciprocal(1.0 + jnp.exp(-z), approx=True)

    if tn == d:                          # common case: no column tiling
        e_c, i_c = e_full, i_full
    else:                                # N-tiled: take this tile's columns (lane-aligned)
        col = pl.multiple_of(pl.program_id(0) * tn, tn)
        e_c = e_ref[:, pl.ds(col, tn)]
        i_c = i_ref[:, pl.ds(col, tn)]

    e32 = e_c.astype(jnp.float32)
    i32 = i_c.astype(jnp.float32)
    # att*i + (1-att)*e == e + att*(i - e): one fewer multiply / full-tile temp.
    o_ref[...] = (e32 + att * (i32 - e32)).astype(o_ref.dtype)


def _vmem_capacity_bytes():
    try:
        cap = int(getattr(pltpu.get_tpu_info(), "vmem_capacity_bytes", 0))
        if cap > 0:
            return cap
    except Exception:
        pass
    return 64 * 1024 * 1024              # conservative default (v7x per-core VMEM)


def _round_up(x, m):
    return (x + m - 1) // m * m


def _pick_tn(d, w_bytes, budget):
    """Output-column tile: full d if the (worst-case double-buffered) resident
    weight fits, else the largest multiple-of-128 divisor of d that does."""
    if d % 128 != 0:
        return d                         # lane rule: block dim must equal the full dim
    for tn in range(d, 127, -128):
        if d % tn == 0 and 2 * (2 * d) * tn * w_bytes <= 0.45 * budget:
            return tn
    return 128


def _pick_tm(M, d, tn, in_bytes, out_bytes, w_bytes, budget, sublane):
    resident = 2 * (2 * d) * tn * w_bytes + 2 * tn * 4        # weight (2 bufs) + bias
    per_row = (
        2 * 2 * d * in_bytes             # e, i tiles, double-buffered
        + 2 * tn * out_bytes             # out tile, double-buffered
        + 4 * tn * 4                     # z / att / blend f32 temps
        + 2 * d * 2                      # bf16 operand-cast headroom
    )
    tm = (budget - resident) // max(per_row, 1)
    tm = min(1024, tm, _round_up(M, sublane))
    if tm >= 256:
        tm = (tm // 256) * 256           # fill the MXU systolic rows
    else:
        tm = max(sublane, (tm // sublane) * sublane)
    return int(tm)


def fusion_module(e_feature, i_feature, weight, bias, *, mxu_dtype=None,
                  bf16_matmul_min_d=512, tm=None, tn=None,
                  single_buffer_weight=True):
    """e_feature, i_feature: [b, l, d]; weight: [d, 2d]; bias: [d] (PyTorch Linear layout)."""
    assert e_feature.shape == i_feature.shape and e_feature.dtype == i_feature.dtype
    b, l, d = e_feature.shape
    assert weight.shape == (d, 2 * d) and bias.shape == (d,)
    M = b * l
    in_dtype = e_feature.dtype
    in_bytes = jnp.dtype(in_dtype).itemsize
    out_bytes = in_bytes

    # MXU operand precision: bf16 cast only pays off once compute-bound (large d).
    if mxu_dtype is None:
        if in_dtype == jnp.float32 and d >= bf16_matmul_min_d:
            mxu_dtype = jnp.bfloat16
        else:
            mxu_dtype = in_dtype
    w_bytes = jnp.dtype(mxu_dtype).itemsize

    capacity = _vmem_capacity_bytes()
    budget = int(0.70 * capacity)
    sublane = 8 if in_bytes >= 4 else (16 if in_bytes == 2 else 32)

    if tn is None:
        tn = _pick_tn(d, w_bytes, budget)
    if tm is None:
        tm = _pick_tm(M, d, tn, in_bytes, out_bytes, w_bytes, budget, sublane)

    grid_n = pl.cdiv(d, tn)              # tn divides d by construction (or tn == d)
    grid_m = pl.cdiv(M, tm)              # ragged last row-block masked by Pallas

    e2 = e_feature.reshape(M, d)
    i2 = i_feature.reshape(M, d)
    # Pre-transposed weight as [2, d, d]: wt[0] = W[:, :d]^T, wt[1] = W[:, d:]^T.
    wt = weight.T.reshape(2, d, d).astype(mxu_dtype)
    b2 = bias.reshape(1, d).astype(jnp.float32)

    vmem_est = (
        2 * (2 * d) * tn * w_bytes       # weight (worst case: 2 buffers)
        + 2 * tn * 4                     # bias
        + 2 * 2 * tm * d * in_bytes      # e, i (2 buffers each)
        + 2 * tm * tn * out_bytes        # out (2 buffers)
        + 4 * tm * tn * 4                # z / att / blend f32 temps
        + 2 * tm * d * 2                 # bf16 cast copies
    )
    vmem_limit = int(min(0.85 * capacity, max(32 * 1024 * 1024, 1.4 * vmem_est)))

    cost = pl.CostEstimate(
        flops=4 * M * d * d,
        transcendentals=M * d,
        bytes_accessed=(2 * M * d * in_bytes + M * d * out_bytes
                        + 2 * d * d * w_bytes + d * 4),
    )
    out_shape = jax.ShapeDtypeStruct((M, d), in_dtype)

    def build_and_call(use_single_buffer):
        res_kwargs = {"pipeline_mode": pl.Buffered(1)} if use_single_buffer else {}
        grid_spec = pltpu.PrefetchScalarGridSpec(
            num_scalar_prefetch=0,
            grid=(grid_n, grid_m),                                   # n outer (usually 1), m inner
            in_specs=[
                pl.BlockSpec((tm, d), lambda n, m: (m, 0)),          # e rows
                pl.BlockSpec((tm, d), lambda n, m: (m, 0)),          # i rows
                pl.BlockSpec((2, d, tn), lambda n, m: (0, 0, n),
                             **res_kwargs),                          # W^T halves (resident)
                pl.BlockSpec((1, tn), lambda n, m: (0, n),
                             **res_kwargs),                          # bias (resident)
            ],
            out_specs=pl.BlockSpec((tm, tn), lambda n, m: (m, n)),
        )
        return pl.pallas_call(
            _fusion_kernel,
            out_shape=out_shape,
            grid_spec=grid_spec,
            compiler_params=pltpu.CompilerParams(
                dimension_semantics=("arbitrary", "parallel"),
                vmem_limit_bytes=vmem_limit,
            ),
            cost_estimate=cost,
        )(e2, i2, wt, b2)

    if single_buffer_weight:
        try:
            out = build_and_call(True)
        except Exception:  # fall back if pipeline_mode=pl.Buffered(1) is rejected
            out = build_and_call(False)
    else:
        out = build_and_call(False)

    return out.reshape(b, l, d)


def _reference(e_feature, i_feature, weight, bias):
    e32 = e_feature.astype(jnp.float32)
    i32 = i_feature.astype(jnp.float32)
    f = jnp.concatenate([e32, i32], axis=2)
    att = jax.nn.sigmoid(
        jnp.einsum("bld,od->blo", f, weight.astype(jnp.float32))
        + bias.astype(jnp.float32)
    )
    return att * i32 + (1.0 - att) * e32


def _make_inputs(key, b, l, d, dtype):
    k_e, k_i, k_w, k_b = jax.random.split(key, 4)
    e = jax.random.normal(k_e, (b, l, d), dtype=jnp.float32).astype(dtype)
    i = jax.random.normal(k_i, (b, l, d), dtype=jnp.float32).astype(dtype)
    bound = 1.0 / jnp.sqrt(2.0 * d)
    w = jax.random.uniform(k_w, (d, 2 * d), jnp.float32, -bound, bound)
    bi = jax.random.uniform(k_b, (d,), jnp.float32, -bound, bound)
    return e, i, w, bi


if __name__ == "__main__":
    key = jax.random.PRNGKey(0)
    cases = [
        # (b, l,  d,  dtype,        forced mxu_dtype, atol)
        (2, 13, 128, jnp.float32, None, 2e-2),          # ragged row tile, f32 MXU
        (2, 40, 256, jnp.bfloat16, None, 6e-2),         # bf16 inputs / bf16 MXU
        (2, 9, 96, jnp.float32, None, 2e-2),             # d not a multiple of 128
        (2, 16, 128, jnp.float32, jnp.bfloat16, 3e-2),   # forced bf16 operand cast
    ]
    for idx, (b, l, d, dtype, mxu, atol) in enumerate(cases):
        key, sub = jax.random.split(key)
        e, i, w, bi = _make_inputs(sub, b, l, d, dtype)
        out = fusion_module(e, i, w, bi, mxu_dtype=mxu)
        out = jax.block_until_ready(out)
        assert out.shape == (b, l, d)
        assert out.dtype == dtype
        ref = _reference(e, i, w, bi)
        err = float(jnp.max(jnp.abs(out.astype(jnp.float32) - ref)))
        assert err <= atol, f"case {idx}: max abs err {err} > {atol}"
    print("KERNEL_OK")
</pallas_src>

<mosaic_0001>
module attributes {stable_mosaic.version = 11 : i64} {
  func.func @_fusion_kernel(%arg0: i32, %arg1: i32, %arg2: memref<32x128xf32, #tpu.memory_space<vmem>>, %arg3: memref<32x128xf32, #tpu.memory_space<vmem>>, %arg4: memref<2x128x128xf32, #tpu.memory_space<vmem>>, %arg5: memref<1x128xf32, #tpu.memory_space<vmem>>, %arg6: memref<32x128xf32, #tpu.memory_space<vmem>>) attributes {dimension_semantics = [#tpu.dimension_semantics<arbitrary>, #tpu.dimension_semantics<parallel>], iteration_bounds = array<i64: 1, 1>, scalar_prefetch = 0 : i64, scratch_operands = 0 : i64, tpu.core_type = #tpu.core_type<tc>, window_params = [{transform_indices = @transform_0, window_bounds = array<i64: 32, 128>}, {transform_indices = @transform_1, window_bounds = array<i64: 32, 128>}, {pipeline_mode = #tpu.pipeline_mode<synchronous>, transform_indices = @transform_2, window_bounds = array<i64: 2, 128, 128>}, {pipeline_mode = #tpu.pipeline_mode<synchronous>, transform_indices = @transform_3, window_bounds = array<i64: 1, 128>}, {transform_indices = @transform_4, window_bounds = array<i64: 32, 128>}]} {
    %c0 = arith.constant 0 : index
    %c0_0 = arith.constant 0 : index
    %0 = vector.load %arg2[%c0, %c0_0] : memref<32x128xf32, #tpu.memory_space<vmem>>, vector<32x128xf32>
    %c0_1 = arith.constant 0 : index
    %c0_2 = arith.constant 0 : index
    %1 = vector.load %arg3[%c0_1, %c0_2] : memref<32x128xf32, #tpu.memory_space<vmem>>, vector<32x128xf32>
    %c0_3 = arith.constant 0 : index
    %c0_4 = arith.constant 0 : index
    %c0_5 = arith.constant 0 : index
    %2 = vector.load %arg4[%c0_3, %c0_4, %c0_5] : memref<2x128x128xf32, #tpu.memory_space<vmem>>, vector<1x128x128xf32>
    %3 = vector.shape_cast %2 : vector<1x128x128xf32> to vector<128x128xf32>
    %c1 = arith.constant 1 : index
    %c0_6 = arith.constant 0 : index
    %c0_7 = arith.constant 0 : index
    %4 = vector.load %arg4[%c1, %c0_6, %c0_7] : memref<2x128x128xf32, #tpu.memory_space<vmem>>, vector<1x128x128xf32>
    %5 = vector.shape_cast %4 : vector<1x128x128xf32> to vector<128x128xf32>
    %cst = arith.constant dense<0.000000e+00> : vector<32x128xf32>
    %6 = tpu.matmul %0, %3, %cst {dimension_numbers = #tpu.dot_dimension_numbers<[1], [0], [0], [1], [0, 0, 1, 1], [], []>} : vector<32x128xf32>, vector<128x128xf32>, vector<32x128xf32> -> vector<32x128xf32>
    %cst_8 = arith.constant dense<0.000000e+00> : vector<32x128xf32>
    %7 = tpu.matmul %1, %5, %cst_8 {dimension_numbers = #tpu.dot_dimension_numbers<[1], [0], [0], [1], [0, 0, 1, 1], [], []>} : vector<32x128xf32>, vector<128x128xf32>, vector<32x128xf32> -> vector<32x128xf32>
    %8 = arith.addf %6, %7 : vector<32x128xf32>
    %c0_9 = arith.constant 0 : index
    %c0_10 = arith.constant 0 : index
    %9 = vector.load %arg5[%c0_9, %c0_10] : memref<1x128xf32, #tpu.memory_space<vmem>>, vector<1x128xf32>
    %10 = vector.broadcast %9 : vector<1x128xf32> to vector<32x128xf32>
    %11 = arith.addf %8, %10 : vector<32x128xf32>
    %cst_11 = arith.constant 0.000000e+00 : f32
    %12 = vector.broadcast %cst_11 : f32 to vector<32x128xf32>
    %13 = arith.subf %12, %11 : vector<32x128xf32>
    %14 = math.exp %13 : vector<32x128xf32>
    %cst_12 = arith.constant 1.000000e+00 : f32
    %15 = vector.broadcast %cst_12 : f32 to vector<32x128xf32>
    %16 = arith.addf %15, %14 : vector<32x128xf32>
    %17 = tpu.reciprocal %16 {approx = true} : vector<32x128xf32> -> vector<32x128xf32>
    %18 = arith.subf %1, %0 : vector<32x128xf32>
    %19 = arith.mulf %17, %18 : vector<32x128xf32>
    %20 = arith.addf %0, %19 : vector<32x128xf32>
    %c0_13 = arith.constant 0 : index
    %c0_14 = arith.constant 0 : index
    %21 = vector.load %arg6[%c0_13, %c0_14] : memref<32x128xf32, #tpu.memory_space<vmem>>, vector<32x128xf32>
    tpu.vector_store %arg6[%c0_13, %c0_14], %20 {strides = array<i32>} : memref<32x128xf32, #tpu.memory_space<vmem>>, vector<32x128xf32>,
    return
  }
  func.func @transform_0(%arg0: i32, %arg1: i32) -> (i32, i32) {
    %c0_i32 = arith.constant 0 : i32
    %c0_i32_0 = arith.constant 0 : i32
    return %arg1, %c0_i32 : i32, i32
  }
  func.func @transform_1(%arg0: i32, %arg1: i32) -> (i32, i32) {
    %c0_i32 = arith.constant 0 : i32
    %c0_i32_0 = arith.constant 0 : i32
    return %arg1, %c0_i32 : i32, i32
  }
  func.func @transform_2(%arg0: i32, %arg1: i32) -> (i32, i32, i32) {
    %c0_i32 = arith.constant 0 : i32
    %c0_i32_0 = arith.constant 0 : i32
    %c0_i32_1 = arith.constant 0 : i32
    return %c0_i32, %c0_i32_0, %arg0 : i32, i32, i32
  }
  func.func @transform_3(%arg0: i32, %arg1: i32) -> (i32, i32) {
    %c0_i32 = arith.constant 0 : i32
    %c0_i32_0 = arith.constant 0 : i32
    return %c0_i32, %arg0 : i32, i32
  }
  func.func @transform_4(%arg0: i32, %arg1: i32) -> (i32, i32) {
    %c0_i32 = arith.constant 0 : i32
    return %arg1, %arg0 : i32, i32
  }
}

module attributes {stable_mosaic.version = 11 : i64} {
  func.func @_fusion_kernel(%arg0: i32, %arg1: i32, %arg2: memref<32x128xf32, #tpu.memory_space<vmem>>, %arg3: memref<32x128xf32, #tpu.memory_space<vmem>>, %arg4: memref<2x128x128xf32, #tpu.memory_space<vmem>>, %arg5: memref<1x128xf32, #tpu.memory_space<vmem>>, %arg6: memref<32x128xf32, #tpu.memory_space<vmem>>) attributes {dimension_semantics = [#tpu.dimension_semantics<arbitrary>, #tpu.dimension_semantics<parallel>], iteration_bounds = array<i64: 1, 1>, scalar_prefetch = 0 : i64, scratch_operands = 0 : i64, tpu.core_type = #tpu.core_type<tc>, window_params = [{transform_indices = @transform_0, window_bounds = array<i64: 32, 128>}, {transform_indices = @transform_1, window_bounds = array<i64: 32, 128>}, {transform_indices = @transform_2, window_bounds = array<i64: 2, 128, 128>}, {transform_indices = @transform_3, window_bounds = array<i64: 1, 128>}, {transform_indices = @transform_4, window_bounds = array<i64: 32, 128>}]} {
    %c0 = arith.constant 0 : index
    %c0_0 = arith.constant 0 : index
    %0 = vector.load %arg2[%c0, %c0_0] : memref<32x128xf32, #tpu.memory_space<vmem>>, vector<32x128xf32>
    %c0_1 = arith.constant 0 : index
    %c0_2 = arith.constant 0 : index
    %1 = vector.load %arg3[%c0_1, %c0_2] : memref<32x128xf32, #tpu.memory_space<vmem>>, vector<32x128xf32>
    %c0_3 = arith.constant 0 : index
    %c0_4 = arith.constant 0 : index
    %c0_5 = arith.constant 0 : index
    %2 = vector.load %arg4[%c0_3, %c0_4, %c0_5] : memref<2x128x128xf32, #tpu.memory_space<vmem>>, vector<1x128x128xf32>
    %3 = vector.shape_cast %2 : vector<1x128x128xf32> to vector<128x128xf32>
    %c1 = arith.constant 1 : index
    %c0_6 = arith.constant 0 : index
    %c0_7 = arith.constant 0 : index
    %4 = vector.load %arg4[%c1, %c0_6, %c0_7] : memref<2x128x128xf32, #tpu.memory_space<vmem>>, vector<1x128x128xf32>
    %5 = vector.shape_cast %4 : vector<1x128x128xf32> to vector<128x128xf32>
    %cst = arith.constant dense<0.000000e+00> : vector<32x128xf32>
    %6 = tpu.matmul %0, %3, %cst {dimension_numbers = #tpu.dot_dimension_numbers<[1], [0], [0], [1], [0, 0, 1, 1], [], []>} : vector<32x128xf32>, vector<128x128xf32>, vector<32x128xf32> -> vector<32x128xf32>
    %cst_8 = arith.constant dense<0.000000e+00> : vector<32x128xf32>
    %7 = tpu.matmul %1, %5, %cst_8 {dimension_numbers = #tpu.dot_dimension_numbers<[1], [0], [0], [1], [0, 0, 1, 1], [], []>} : vector<32x128xf32>, vector<128x128xf32>, vector<32x128xf32> -> vector<32x128xf32>
    %8 = arith.addf %6, %7 : vector<32x128xf32>
    %c0_9 = arith.constant 0 : index
    %c0_10 = arith.constant 0 : index
    %9 = vector.load %arg5[%c0_9, %c0_10] : memref<1x128xf32, #tpu.memory_space<vmem>>, vector<1x128xf32>
    %10 = vector.broadcast %9 : vector<1x128xf32> to vector<32x128xf32>
    %11 = arith.addf %8, %10 : vector<32x128xf32>
    %cst_11 = arith.constant 0.000000e+00 : f32
    %12 = vector.broadcast %cst_11 : f32 to vector<32x128xf32>
    %13 = arith.subf %12, %11 : vector<32x128xf32>
    %14 = math.exp %13 : vector<32x128xf32>
    %cst_12 = arith.constant 1.000000e+00 : f32
    %15 = vector.broadcast %cst_12 : f32 to vector<32x128xf32>
    %16 = arith.addf %15, %14 : vector<32x128xf32>
    %17 = tpu.reciprocal %16 {approx = true} : vector<32x128xf32> -> vector<32x128xf32>
    %18 = arith.subf %1, %0 : vector<32x128xf32>
    %19 = arith.mulf %17, %18 : vector<32x128xf32>
    %20 = arith.addf %0, %19 : vector<32x128xf32>
    %c0_13 = arith.constant 0 : index
    %c0_14 = arith.constant 0 : index
    %21 = vector.load %arg6[%c0_13, %c0_14] : memref<32x128xf32, #tpu.memory_space<vmem>>, vector<32x128xf32>
    tpu.vector_store %arg6[%c0_13, %c0_14], %20 {strides = array<i32>} : memref<32x128xf32, #tpu.memory_space<vmem>>, vector<32x128xf32>,
    return
  }
  func.func @transform_0(%arg0: i32, %arg1: i32) -> (i32, i32) {
    %c0_i32 = arith.constant 0 : i32
    %c0_i32_0 = arith.constant 0 : i32
    return %arg1, %c0_i32 : i32, i32
  }
  func.func @transform_1(%arg0: i32, %arg1: i32) -> (i32, i32) {
    %c0_i32 = arith.constant 0 : i32
    %c0_i32_0 = arith.constant 0 : i32
    return %arg1, %c0_i32 : i32, i32
  }
  func.func @transform_2(%arg0: i32, %arg1: i32) -> (i32, i32, i32) {
    %c0_i32 = arith.constant 0 : i32
    %c0_i32_0 = arith.constant 0 : i32
    %c0_i32_1 = arith.constant 0 : i32
    return %c0_i32, %c0_i32_0, %arg0 : i32, i32, i32
  }
  func.func @transform_3(%arg0: i32, %arg1: i32) -> (i32, i32) {
    %c0_i32 = arith.constant 0 : i32
    %c0_i32_0 = arith.constant 0 : i32
    return %c0_i32, %arg0 : i32, i32
  }
  func.func @transform_4(%arg0: i32, %arg1: i32) -> (i32, i32) {
    %c0_i32 = arith.constant 0 : i32
    return %arg1, %arg0 : i32, i32
  }
}

</mosaic_0001>

<bundles_post_ra>
// kernel: tpu_custom_call.1
= control target key start
LH: loop header
LB: loop body
LE: loop exit
PB: predicated region body
PF: predicated region fallthrough
CT: control target
= control target key end

     0   :  { %9 = vsyncpa [#allocation3], 0  ;;  %s755_s0 = inlined_call_operand.hbm [shape: f32[26,128], index: 0, kind: input, shape index: {}]   ;;  %s756_s1 = inlined_call_operand.hbm [shape: f32[26,128], index: 1, kind: input, shape index: {}]   ;;  %s757_s2 = inlined_call_operand.hbm [shape: f32[2,128,128], index: 2, kind: input, shape index: {}]   ;;  %s758_s3 = inlined_call_operand.vmem [shape: f32[1,128], index: 3, kind: input, shape index: {}]   ;;  %s759_s4 = inlined_call_operand.hbm [shape: f32[26,128], index: 4, kind: output, shape index: {}]  }
   0x1   :  { %10 = vsyncpa [#allocation6], 0 }
   0x2   :  { %11 = vsyncpa [#allocation4], 0  ;;  %s636_s15 = smov [#allocation5]   ;;  %s637_s17 = smov [#allocation2]  }
   0x3   :  { %s29_s16 = sshll.u32 %s636_s15, 4  ;;  %s17_s18 = sshll.u32 %s637_s17, 4  ;;  %s30_s16 = int_to_ptr.vmem [resolvable:$true] %s29_s16  ;;  %s667_s18 = int_to_ptr.vmem [resolvable:$true] %s17_s18 }
   0x4   :  { %s542_s21 = scalar_lea.hbm %s756_s1, 512 }
   0x5   :  { %p543_p0 = scmp.ne.s32.totalorder %s756_s1, %s542_s21  ;;  %p546_p1 = scmp.lt.u32.totalorder %s542_s21, %s756_s1 }
   0x7   :  { %p548_p2 = pnand %p546_p1, %p543_p0 }
   0x9   :  { %551 = shalt.err (!%p548_p2)
}
   0xa   :  { %s552_s26 = scalar_lea.vmem %s30_s16, 512  ;;  %p557_p4 = scmp.lt.s32.totalorder %s30_s16, %s30_s16 }
   0xb   :  { %p553_p3 = scmp.ne.s32.totalorder %s30_s16, %s552_s26  ;;  %p558_p5 = scmp.lt.s32.totalorder %s552_s26, %s552_s26 }
   0xd   :  { %p559_p6 = por %p558_p5, %p557_p4 }
   0xf   :  { %p560_p7 = pnand %p559_p6, %p553_p3 }
  0x11   :  { %563 = shalt.err (!%p560_p7)
}
  0x12   :  { %s638_s27 = smov 128   ;;  %s639_s28 = smov 8  }
  0x13   :  { %35 = dma.hbm_to_vmem [thread:$0]  %s756_s1, 512, %s30_s16, [#allocation6], %s638_s27, %s638_s27, %s639_s28  }
  0x14   :  { %s564_s7 = scalar_lea.hbm %s755_s0, 512 }
  0x15   :  { %p565_p8 = scmp.ne.s32.totalorder %s755_s0, %s564_s7  ;;  %p568_p9 = scmp.lt.u32.totalorder %s564_s7, %s755_s0 }
  0x17   :  { %p570_p10 = pnand %p568_p9, %p565_p8 }
  0x19   :  { %573 = shalt.err (!%p570_p10)
}
  0x1a   :  { %s574_s12 = scalar_lea.vmem %s667_s18, 512  ;;  %p579_p12 = scmp.lt.s32.totalorder %s667_s18, %s667_s18 }
  0x1b   :  { %p575_p11 = scmp.ne.s32.totalorder %s667_s18, %s574_s12  ;;  %p580_p13 = scmp.lt.s32.totalorder %s574_s12, %s574_s12 }
  0x1d   :  { %p581_p0 = por %p580_p13, %p579_p12 }
  0x1f   :  { %p582_p1 = pnand %p581_p0, %p575_p11 }
  0x21   :  { %585 = shalt.err (!%p582_p1)
}
  0x22   :  { %23 = dma.hbm_to_vmem [thread:$0]  %s755_s0, 512, %s667_s18, [#allocation3], %s638_s27, %s638_s27, %s639_s28  }
  0x23   :  { %s640_s14 = smov [#allocation7]   ;;  %s586_s19 = scalar_lea.hbm %s757_s2, 4096 }
  0x24   :  { %s41_s15 = sshll.u32 %s640_s14, 4  ;;  %p587_p2 = scmp.ne.s32.totalorder %s757_s2, %s586_s19  ;;  %s42_s15 = int_to_ptr.vmem [resolvable:$true] %s41_s15 }
  0x25   :  { %p590_p3 = scmp.lt.u32.totalorder %s586_s19, %s757_s2 }
  0x27   :  { %p592_p4 = pnand %p590_p3, %p587_p2 }
  0x29   :  { %595 = shalt.err (!%p592_p4)
}
  0x2a   :  { %s596_s24 = scalar_lea.vmem %s42_s15, 4096  ;;  %p601_p6 = scmp.lt.s32.totalorder %s42_s15, %s42_s15 }
  0x2b   :  { %p597_p5 = scmp.ne.s32.totalorder %s42_s15, %s596_s24  ;;  %p602_p7 = scmp.lt.s32.totalorder %s596_s24, %s596_s24 }
  0x2d   :  { %p603_p8 = por %p602_p7, %p601_p6 }
  0x2f   :  { %p604_p9 = pnand %p603_p8, %p597_p5 }
  0x31   :  { %607 = shalt.err (!%p604_p9)
}
  0x32   :  { %47 = dma.hbm_to_vmem [thread:$0]  %s757_s2, 4096, %s42_s15, [#allocation6], %s638_s27, %s638_s27, %s639_s28  }
  0x33   :  { %630 = dma.done.wait [#allocation3], 512  }
  0x34   :  { %631 = vsyncadd [#allocation3], 4294966784 }
  0x35   :  { %632 = dma.done.wait [#allocation6], 4608  }
  0x36   :  { %633 = vsyncadd [#allocation6], 4294962688  ;;  %v84_v0 = vld [vmem:[#allocation7 + $0x80] sm:$0xff]  ;;  %v85_v1 = vld [vmem:[#allocation7 + $0x88] sm:$0xff] }
  0x37   :  { %v67_v2 = vld [vmem:[#allocation7] sm:$0xff]  ;;  %v452_v3 = vpack.c.bf16 %v85_v1, %v84_v0  ;;  %v68_v4 = vld [vmem:[#allocation7 + $0x8] sm:$0xff]  ;;  %v86_v5 = vld [vmem:[#allocation7 + $0x90] sm:$0xff] }
  0x38   :  { %v87_v6 = vld [vmem:[#allocation7 + $0x98] sm:$0xff]  ;;  %v484_v7 = vpack.c.bf16 %v68_v4, %v67_v2  ;;  %v69_v9 = vld [vmem:[#allocation7 + $0x10] sm:$0xff]  ;;  %v88_v11 = vld [vmem:[#allocation7 + $0xa0] sm:$0xff] }
  0x39   :  { %v456_v8 = vpack.c.bf16 %v87_v6, %v86_v5  ;;  %v70_v10 = vld [vmem:[#allocation7 + $0x18] sm:$0xff]  ;;  %453 = vmatprep.subr.bf16.mxu1 %v452_v3  ;;  %v89_v13 = vld [vmem:[#allocation7 + $0xa8] sm:$0xff]  ;;  %v71_v14 = vld [vmem:[#allocation7 + $0x20] sm:$0xff] }
  0x3a   :  { %v488_v12 = vpack.c.bf16 %v70_v10, %v69_v9  ;;  %v72_v15 = vld [vmem:[#allocation7 + $0x28] sm:$0xff]  ;;  %485 = vmatprep.subr.bf16.mxu0 %v484_v7  ;;  %455 = vmatpush3.bf16.msra.mxu1 %v452_v3  ;;  %v460_v16 = vpack.c.bf16 %v89_v13, %v88_v11  ;;  %v90_v18 = vld [vmem:[#allocation7 + $0xb0] sm:$0xff]  ;;  %v91_v19 = vld [vmem:[#allocation7 + $0xb8] sm:$0xff] }
  0x3b   :  { %487 = vmatpush3.bf16.msra.mxu0 %v484_v7  ;;  %457 = vmatprep.subr.bf16.mxu1 %v456_v8  ;;  %v492_v17 = vpack.c.bf16 %v72_v15, %v71_v14  ;;  %v73_v20 = vld [vmem:[#allocation7 + $0x30] sm:$0xff]  ;;  %v74_v21 = vld [vmem:[#allocation7 + $0x38] sm:$0xff]  ;;  %v464_v22 = vpack.c.bf16 %v91_v19, %v90_v18  ;;  %v92_v24 = vld [vmem:[#allocation7 + $0xc0] sm:$0xff] }
  0x3c   :  { %489 = vmatprep.subr.bf16.mxu0 %v488_v12  ;;  %v496_v23 = vpack.c.bf16 %v74_v21, %v73_v20  ;;  %v93_v25 = vld [vmem:[#allocation7 + $0xc8] sm:$0xff]  ;;  %v719_v26 = vld [vmem:[#allocation2] sm:$0xff]  ;;  %v94_v32 = vld [vmem:[#allocation7 + $0xd0] sm:$0xff] }
  0x3d   :  { %v75_v27 = vld [vmem:[#allocation7 + $0x40] sm:$0xff]  ;;  %v76_v28 = vld [vmem:[#allocation7 + $0x48] sm:$0xff]  ;;  %446 = vmatprep.mubr.f32.mxu0 %v719_v26  ;;  %v468_v30 = vpack.c.bf16 %v93_v25, %v92_v24  ;;  %v95_v33 = vld [vmem:[#allocation7 + $0xd8] sm:$0xff] }
  0x3e   :  { %459 = vmatpush3.bf16.msra.mxu1 %v456_v8  ;;  %v721_v29 = vld [vmem:[#allocation5] sm:$0xff]  ;;  %v500_v31 = vpack.c.bf16 %v76_v28, %v75_v27  ;;  %v77_v34 = vld [vmem:[#allocation7 + $0x50] sm:$0xff]  ;;  %v78_v35 = vld [vmem:[#allocation7 + $0x58] sm:$0xff]  ;;  %v472_v36 = vpack.c.bf16 %v95_v33, %v94_v32 }
  0x3f   :  { %491 = vmatpush3.bf16.msra.mxu0 %v488_v12  ;;  %461 = vmatprep.subr.bf16.mxu1 %v460_v16  ;;  %v504_v37 = vpack.c.bf16 %v78_v35, %v77_v34  ;;  %v96_v38 = vld [vmem:[#allocation7 + $0xe0] sm:$0xff]  ;;  %v97_v39 = vld [vmem:[#allocation7 + $0xe8] sm:$0xff]  ;;  %v98_v44 = vld [vmem:[#allocation7 + $0xf0] sm:$0xff]  ;;  %v301_v27 = vsub.f32 %v721_v29, %v719_v26 }
  0x40   :  { %493 = vmatprep.subr.bf16.mxu0 %v492_v17  ;;  %408 = vmatprep.mubr.f32.mxu1 %v721_v29  ;;  %v79_v40 = vld [vmem:[#allocation7 + $0x60] sm:$0xff]  ;;  %v80_v41 = vld [vmem:[#allocation7 + $0x68] sm:$0xff]  ;;  %v476_v42 = vpack.c.bf16 %v97_v39, %v96_v38  ;;  %v99_v45 = vld [vmem:[#allocation7 + $0xf8] sm:$0xff] }
  0x41   :  { %v508_v43 = vpack.c.bf16 %v80_v41, %v79_v40  ;;  %v81_v46 = vld [vmem:[#allocation7 + $0x70] sm:$0xff]  ;;  %v82_v47 = vld [vmem:[#allocation7 + $0x78] sm:$0xff]  ;;  %v480_v48 = vpack.c.bf16 %v99_v45, %v98_v44  ;;  %v64_v50 = vld [vmem:[#allocation5 + $0x8] sm:$0xff] }
  0x42   :  { %463 = vmatpush3.bf16.msra.mxu1 %v460_v16  ;;  %v512_v49 = vpack.c.bf16 %v82_v47, %v81_v46  ;;  %v60_v51 = vld [vmem:[#allocation2 + $0x8] sm:$0xff]  ;;  %v725_v52 = vld [vmem:[#allocation5 + $0x10] sm:$0xff]  ;;  %v66_v54 = vld [vmem:[#allocation5 + $0x18] sm:$0xff] }
  0x43   :  { %495 = vmatpush3.bf16.msra.mxu0 %v492_v17  ;;  %465 = vmatprep.subr.bf16.mxu1 %v464_v22  ;;  %v727_v53 = vld [vmem:[#allocation2 + $0x10] sm:$0xff]  ;;  %v62_v55 = vld [vmem:[#allocation2 + $0x18] sm:$0xff]  ;;  %v335_v58 = vld [vmem:[%s758_s3] ss:$0 sm:$0xff]  ;;  %v302_v25 = vsub.f32 %v64_v50, %v60_v51  ;;  %s641_s3 = smov [#allocation8]  }
  0x44   :  { %497 = vmatprep.subr.bf16.mxu0 %v496_v23  ;;  %v303_v33 = vsub.f32 %v725_v52, %v727_v53  ;;  %s322_s26 = sshll.u32 %s641_s3, 4  ;;  %s323_s26 = int_to_ptr.vmem [resolvable:$true] %s322_s26 }
  0x45   :  { %s608_s29 = scalar_lea.vmem %s323_s26, 512  ;;  %p613_p11 = scmp.lt.s32.totalorder %s323_s26, %s323_s26 }
  0x46   :  { %467 = vmatpush3.bf16.msra.mxu1 %v464_v22  ;;  %p609_p10 = scmp.ne.s32.totalorder %s323_s26, %s608_s29  ;;  %p614_p12 = scmp.lt.s32.totalorder %s608_s29, %s608_s29 }
  0x47   :  { %499 = vmatpush3.bf16.msra.mxu0 %v496_v23  ;;  %469 = vmatprep.subr.bf16.mxu1 %v468_v30 }
  0x48   :  { %501 = vmatprep.subr.bf16.mxu0 %v500_v31  ;;  %p615_p13 = por %p614_p12, %p613_p11 }
  0x4a   :  { %471 = vmatpush3.bf16.msra.mxu1 %v468_v30  ;;  %p616_p0 = pnand %p615_p13, %p609_p10 }
  0x4b   :  { %503 = vmatpush3.bf16.msra.mxu0 %v500_v31  ;;  %473 = vmatprep.subr.bf16.mxu1 %v472_v36  ;;  %v304_v31 = vsub.f32 %v66_v54, %v62_v55 }
  0x4c   :  { %505 = vmatprep.subr.bf16.mxu0 %v504_v37 }
  0x4e   :  { %475 = vmatpush3.bf16.msra.mxu1 %v472_v36 }
  0x4f   :  { %507 = vmatpush3.bf16.msra.mxu0 %v504_v37  ;;  %477 = vmatprep.subr.bf16.mxu1 %v476_v42 }
  0x50   :  { %509 = vmatprep.subr.bf16.mxu0 %v508_v43 }
  0x52   :  { %479 = vmatpush3.bf16.msra.mxu1 %v476_v42 }
  0x53   :  { %511 = vmatpush3.bf16.msra.mxu0 %v508_v43  ;;  %481 = vmatprep.subr.bf16.mxu1 %v480_v48 }
  0x54   :  { %513 = vmatprep.subr.bf16.mxu0 %v512_v49 }
  0x56   :  { %483 = vmatpush3.bf16.msra.mxu1 %v480_v48 }
  0x57   :  { %515 = vmatpush3.bf16.msra.mxu0 %v512_v49 }
  0x59   :  { %409 = vmatmul.mubr.f32.vlgmr.msra.gmra.mrb[0].mxu1 %v64_v50 }
  0x5a   :  { %447 = vmatmul.mubr.f32.vlgmr.msra.gmra.mrb[0].mxu0 %v60_v51  ;;  %411 = vmatprep.mubr.f32.mxu1 %v725_v52 }
  0x5b   :  { %449 = vmatprep.mubr.f32.mxu0 %v727_v53 }
  0x5d   :  { %412 = vmatmul.mubr.f32.gmra.mrb[2].mxu1 %v66_v54 }
  0x5e   :  { %450 = vmatmul.mubr.f32.gmra.mrb[2].mxu0 %v62_v55 }
 0x12c   :  { %v410_v56 = vpop.f32.mrb[0].mxu1 }
 0x12d   :  { %v448_v57 = vpop.f32.mrb[0].mxu0  ;;  %v166_v59 = vpop.f32.mrb[1].mxu1 }
 0x12e   :  { %v257_v60 = vadd.f32 %v448_v57, %v410_v56  ;;  %v251_v61 = vpop.f32.mrb[1].mxu0 }
 0x12f   :  { %v252_v62 = vadd.f32 %v251_v61, %v166_v59 }
 0x130   :  { %v278_v63 = vadd.f32 %v335_v58, %v257_v60  ;;  %v413_v0 = vpop.f32.mrb[2].mxu1 }
 0x131   :  { %v277_v1 = vadd.f32 %v335_v58, %v252_v62  ;;  %v451_v2 = vpop.f32.mrb[2].mxu0  ;;  %v176_v3 = vpop.f32.mrb[3].mxu1 }
 0x132   :  { %v282_v4 = vsub.f32 0.0, %v278_v63  ;;  %v267_v5 = vadd.f32 %v451_v2, %v413_v0  ;;  %v261_v6 = vpop.f32.mrb[3].mxu0 }
 0x133   :  { %v281_v7 = vsub.f32 0.0, %v277_v1  ;;  %v262_v8 = vadd.f32 %v261_v6, %v176_v3 }
 0x134   :  { %v287_v9 = vmul.f32 1.442695, %v282_v4  ;;  %v280_v10 = vadd.f32 %v335_v58, %v267_v5 }
 0x135   :  { %v285_v11 = vmul.f32 1.442695, %v281_v7  ;;  %v279_v12 = vadd.f32 %v335_v58, %v262_v8 }
 0x136   :  { %526 = vpow2.f32 %v287_v9  ;;  %v284_v13 = vsub.f32 0.0, %v280_v10 }
 0x137   :  { %528 = vpow2.f32 %v285_v11  ;;  %v283_v14 = vsub.f32 0.0, %v279_v12 }
 0x138   :  { %v291_v15 = vmul.f32 1.442695, %v284_v13 }
 0x139   :  { %v289_v16 = vmul.f32 1.442695, %v283_v14 }
 0x13a   :  { %530 = vpow2.f32 %v291_v15 }
 0x13b   :  { %532 = vpow2.f32 %v289_v16 }
 0x140   :  { %v527_v17 = vpop.eup %526 }
 0x141   :  { %v529_v18 = vpop.eup %528  ;;  %v294_v19 = vadd.f32 1.0, %v527_v17 }
 0x142   :  { %v293_v20 = vadd.f32 1.0, %v529_v18 }
 0x143   :  { %534 = vrcp.f32 %v294_v19 }
 0x144   :  { %v531_v21 = vpop.eup %530  ;;  %536 = vrcp.f32 %v293_v20 }
 0x145   :  { %v533_v22 = vpop.eup %532  ;;  %v296_v23 = vadd.f32 1.0, %v531_v21 }
 0x146   :  { %v295_v24 = vadd.f32 1.0, %v533_v22 }
 0x147   :  { %538 = vrcp.f32 %v296_v23 }
 0x148   :  { %540 = vrcp.f32 %v295_v24 }
 0x14d   :  { %v535_v28 = vpop.eup %534 }
 0x14e   :  { %v537_v30 = vpop.eup %536  ;;  %v306_v32 = vmul.f32 %v535_v28, %v302_v25 }
 0x14f   :  { %v305_v34 = vmul.f32 %v537_v30, %v301_v27 }
 0x150   :  { %v310_v35 = vadd.f32 %v306_v32, %v60_v51 }
 0x151   :  { %v539_v36 = vpop.eup %538  ;;  %v309_v37 = vadd.f32 %v305_v34, %v719_v26 }
 0x152   :  { %v541_v38 = vpop.eup %540  ;;  %v308_v39 = vmul.f32 %v539_v36, %v304_v31  ;;  %314 = vst [vmem:[#allocation8 + $0x8] sm:$0xff] %v310_v35 }
 0x153   :  { %v307_v40 = vmul.f32 %v541_v38, %v303_v33  ;;  %313 = vst [vmem:[#allocation8] sm:$0xff] %v309_v37 }
 0x154   :  { %v312_v29 = vadd.f32 %v308_v39, %v62_v55 }
 0x155   :  { %v311_v41 = vadd.f32 %v307_v40, %v727_v53 }
 0x156   :  { %316 = vst [vmem:[#allocation8 + $0x18] sm:$0xff] %v312_v29 }
 0x157   :  { %315 = vst [vmem:[#allocation8 + $0x10] sm:$0xff] %v311_v41 }
 0x158   :  { %619 = shalt.err (!%p616_p0)
}
 0x159   :  { %s620_s6 = scalar_lea.hbm %s759_s4, 512 }
 0x15a   :  { %p621_p1 = scmp.ne.s32.totalorder %s759_s4, %s620_s6  ;;  %p624_p2 = scmp.lt.u32.totalorder %s620_s6, %s759_s4 }
 0x15c   :  { %p626_p3 = pnand %p624_p2, %p621_p1 }
 0x15e   :  { %629 = shalt.err (!%p626_p3)
}
 0x15f   :  { %328 = dma.vmem_to_hbm [thread:$0]  %s323_s26, 512, %s759_s4, [#allocation4], %s638_s27, %s638_s27, %s639_s28  }
 0x160   :  { %634 = dma.done.wait [#allocation4], 512  }
 0x161   :  { %635 = vsyncadd [#allocation4], 4294966784 }
 0x162   :  { %332 = vsyncpa [#allocation3], 1 }
 0x163   :  { %333 = vsyncpa [#allocation6], 1 }
 0x164   :  { %334 = vsyncpa [#allocation4], 1 }

// kernel: tpu_custom_call.1
= control target key start
LH: loop header
LB: loop body
LE: loop exit
PB: predicated region body
PF: predicated region fallthrough
CT: control target
= control target key end

     0   :  { %9 = vsyncpa [#allocation3], 0  ;;  %s755_s0 = inlined_call_operand.hbm [shape: f32[26,128], index: 0, kind: input, shape index: {}]   ;;  %s756_s1 = inlined_call_operand.hbm [shape: f32[26,128], index: 1, kind: input, shape index: {}]   ;;  %s757_s2 = inlined_call_operand.hbm [shape: f32[2,128,128], index: 2, kind: input, shape index: {}]   ;;  %s758_s3 = inlined_call_operand.vmem [shape: f32[1,128], index: 3, kind: input, shape index: {}]   ;;  %s759_s4 = inlined_call_operand.hbm [shape: f32[26,128], index: 4, kind: output, shape index: {}]  }
   0x1   :  { %10 = vsyncpa [#allocation6], 0 }
   0x2   :  { %11 = vsyncpa [#allocation4], 0  ;;  %s636_s15 = smov [#allocation5]   ;;  %s637_s17 = smov [#allocation2]  }
   0x3   :  { %s29_s16 = sshll.u32 %s636_s15, 4  ;;  %s17_s18 = sshll.u32 %s637_s17, 4  ;;  %s30_s16 = int_to_ptr.vmem [resolvable:$true] %s29_s16  ;;  %s667_s18 = int_to_ptr.vmem [resolvable:$true] %s17_s18 }
   0x4   :  { %s542_s21 = scalar_lea.hbm %s756_s1, 512 }
   0x5   :  { %p543_p0 = scmp.ne.s32.totalorder %s756_s1, %s542_s21  ;;  %p546_p1 = scmp.lt.u32.totalorder %s542_s21, %s756_s1 }
   0x7   :  { %p548_p2 = pnand %p546_p1, %p543_p0 }
   0x9   :  { %551 = shalt.err (!%p548_p2)
}
   0xa   :  { %s552_s26 = scalar_lea.vmem %s30_s16, 512  ;;  %p557_p4 = scmp.lt.s32.totalorder %s30_s16, %s30_s16 }
   0xb   :  { %p553_p3 = scmp.ne.s32.totalorder %s30_s16, %s552_s26  ;;  %p558_p5 = scmp.lt.s32.totalorder %s552_s26, %s552_s26 }
   0xd   :  { %p559_p6 = por %p558_p5, %p557_p4 }
   0xf   :  { %p560_p7 = pnand %p559_p6, %p553_p3 }
  0x11   :  { %563 = shalt.err (!%p560_p7)
}
  0x12   :  { %s638_s27 = smov 128   ;;  %s639_s28 = smov 8  }
  0x13   :  { %35 = dma.hbm_to_vmem [thread:$0]  %s756_s1, 512, %s30_s16, [#allocation6], %s638_s27, %s638_s27, %s639_s28  }
  0x14   :  { %s564_s7 = scalar_lea.hbm %s755_s0, 512 }
  0x15   :  { %p565_p8 = scmp.ne.s32.totalorder %s755_s0, %s564_s7  ;;  %p568_p9 = scmp.lt.u32.totalorder %s564_s7, %s755_s0 }
  0x17   :  { %p570_p10 = pnand %p568_p9, %p565_p8 }
  0x19   :  { %573 = shalt.err (!%p570_p10)
}
  0x1a   :  { %s574_s12 = scalar_lea.vmem %s667_s18, 512  ;;  %p579_p12 = scmp.lt.s32.totalorder %s667_s18, %s667_s18 }
  0x1b   :  { %p575_p11 = scmp.ne.s32.totalorder %s667_s18, %s574_s12  ;;  %p580_p13 = scmp.lt.s32.totalorder %s574_s12, %s574_s12 }
  0x1d   :  { %p581_p0 = por %p580_p13, %p579_p12 }
  0x1f   :  { %p582_p1 = pnand %p581_p0, %p575_p11 }
  0x21   :  { %585 = shalt.err (!%p582_p1)
}
  0x22   :  { %23 = dma.hbm_to_vmem [thread:$0]  %s755_s0, 512, %s667_s18, [#allocation3], %s638_s27, %s638_s27, %s639_s28  }
  0x23   :  { %s640_s14 = smov [#allocation7]   ;;  %s586_s19 = scalar_lea.hbm %s757_s2, 4096 }
  0x24   :  { %s41_s15 = sshll.u32 %s640_s14, 4  ;;  %p587_p2 = scmp.ne.s32.totalorder %s757_s2, %s586_s19  ;;  %s42_s15 = int_to_ptr.vmem [resolvable:$true] %s41_s15 }
  0x25   :  { %p590_p3 = scmp.lt.u32.totalorder %s586_s19, %s757_s2 }
  0x27   :  { %p592_p4 = pnand %p590_p3, %p587_p2 }
  0x29   :  { %595 = shalt.err (!%p592_p4)
}
  0x2a   :  { %s596_s24 = scalar_lea.vmem %s42_s15, 4096  ;;  %p601_p6 = scmp.lt.s32.totalorder %s42_s15, %s42_s15 }
  0x2b   :  { %p597_p5 = scmp.ne.s32.totalorder %s42_s15, %s596_s24  ;;  %p602_p7 = scmp.lt.s32.totalorder %s596_s24, %s596_s24 }
  0x2d   :  { %p603_p8 = por %p602_p7, %p601_p6 }
  0x2f   :  { %p604_p9 = pnand %p603_p8, %p597_p5 }
  0x31   :  { %607 = shalt.err (!%p604_p9)
}
  0x32   :  { %47 = dma.hbm_to_vmem [thread:$0]  %s757_s2, 4096, %s42_s15, [#allocation6], %s638_s27, %s638_s27, %s639_s28  }
  0x33   :  { %630 = dma.done.wait [#allocation3], 512  }
  0x34   :  { %631 = vsyncadd [#allocation3], 4294966784 }
  0x35   :  { %632 = dma.done.wait [#allocation6], 4608  }
  0x36   :  { %633 = vsyncadd [#allocation6], 4294962688  ;;  %v84_v0 = vld [vmem:[#allocation7 + $0x80] sm:$0xff]  ;;  %v85_v1 = vld [vmem:[#allocation7 + $0x88] sm:$0xff] }
  0x37   :  { %v67_v2 = vld [vmem:[#allocation7] sm:$0xff]  ;;  %v452_v3 = vpack.c.bf16 %v85_v1, %v84_v0  ;;  %v68_v4 = vld [vmem:[#allocation7 + $0x8] sm:$0xff]  ;;  %v86_v5 = vld [vmem:[#allocation7 + $0x90] sm:$0xff] }
  0x38   :  { %v87_v6 = vld [vmem:[#allocation7 + $0x98] sm:$0xff]  ;;  %v484_v7 = vpack.c.bf16 %v68_v4, %v67_v2  ;;  %v69_v9 = vld [vmem:[#allocation7 + $0x10] sm:$0xff]  ;;  %v88_v11 = vld [vmem:[#allocation7 + $0xa0] sm:$0xff] }
  0x39   :  { %v456_v8 = vpack.c.bf16 %v87_v6, %v86_v5  ;;  %v70_v10 = vld [vmem:[#allocation7 + $0x18] sm:$0xff]  ;;  %453 = vmatprep.subr.bf16.mxu1 %v452_v3  ;;  %v89_v13 = vld [vmem:[#allocation7 + $0xa8] sm:$0xff]  ;;  %v71_v14 = vld [vmem:[#allocation7 + $0x20] sm:$0xff] }
  0x3a   :  { %v488_v12 = vpack.c.bf16 %v70_v10, %v69_v9  ;;  %v72_v15 = vld [vmem:[#allocation7 + $0x28] sm:$0xff]  ;;  %485 = vmatprep.subr.bf16.mxu0 %v484_v7  ;;  %455 = vmatpush3.bf16.msra.mxu1 %v452_v3  ;;  %v460_v16 = vpack.c.bf16 %v89_v13, %v88_v11  ;;  %v90_v18 = vld [vmem:[#allocation7 + $0xb0] sm:$0xff]  ;;  %v91_v19 = vld [vmem:[#allocation7 + $0xb8] sm:$0xff] }
  0x3b   :  { %487 = vmatpush3.bf16.msra.mxu0 %v484_v7  ;;  %457 = vmatprep.subr.bf16.mxu1 %v456_v8  ;;  %v492_v17 = vpack.c.bf16 %v72_v15, %v71_v14  ;;  %v73_v20 = vld [vmem:[#allocation7 + $0x30] sm:$0xff]  ;;  %v74_v21 = vld [vmem:[#allocation7 + $0x38] sm:$0xff]  ;;  %v464_v22 = vpack.c.bf16 %v91_v19, %v90_v18  ;;  %v92_v24 = vld [vmem:[#allocation7 + $0xc0] sm:$0xff] }
  0x3c   :  { %489 = vmatprep.subr.bf16.mxu0 %v488_v12  ;;  %v496_v23 = vpack.c.bf16 %v74_v21, %v73_v20  ;;  %v93_v25 = vld [vmem:[#allocation7 + $0xc8] sm:$0xff]  ;;  %v719_v26 = vld [vmem:[#allocation2] sm:$0xff]  ;;  %v94_v32 = vld [vmem:[#allocation7 + $0xd0] sm:$0xff] }
  0x3d   :  { %v75_v27 = vld [vmem:[#allocation7 + $0x40] sm:$0xff]  ;;  %v76_v28 = vld [vmem:[#allocation7 + $0x48] sm:$0xff]  ;;  %446 = vmatprep.mubr.f32.mxu0 %v719_v26  ;;  %v468_v30 = vpack.c.bf16 %v93_v25, %v92_v24  ;;  %v95_v33 = vld [vmem:[#allocation7 + $0xd8] sm:$0xff] }
  0x3e   :  { %459 = vmatpush3.bf16.msra.mxu1 %v456_v8  ;;  %v721_v29 = vld [vmem:[#allocation5] sm:$0xff]  ;;  %v500_v31 = vpack.c.bf16 %v76_v28, %v75_v27  ;;  %v77_v34 = vld [vmem:[#allocation7 + $0x50] sm:$0xff]  ;;  %v78_v35 = vld [vmem:[#allocation7 + $0x58] sm:$0xff]  ;;  %v472_v36 = vpack.c.bf16 %v95_v33, %v94_v32 }
  0x3f   :  { %491 = vmatpush3.bf16.msra.mxu0 %v488_v12  ;;  %461 = vmatprep.subr.bf16.mxu1 %v460_v16  ;;  %v504_v37 = vpack.c.bf16 %v78_v35, %v77_v34  ;;  %v96_v38 = vld [vmem:[#allocation7 + $0xe0] sm:$0xff]  ;;  %v97_v39 = vld [vmem:[#allocation7 + $0xe8] sm:$0xff]  ;;  %v98_v44 = vld [vmem:[#allocation7 + $0xf0] sm:$0xff]  ;;  %v301_v27 = vsub.f32 %v721_v29, %v719_v26 }
  0x40   :  { %493 = vmatprep.subr.bf16.mxu0 %v492_v17  ;;  %408 = vmatprep.mubr.f32.mxu1 %v721_v29  ;;  %v79_v40 = vld [vmem:[#allocation7 + $0x60] sm:$0xff]  ;;  %v80_v41 = vld [vmem:[#allocation7 + $0x68] sm:$0xff]  ;;  %v476_v42 = vpack.c.bf16 %v97_v39, %v96_v38  ;;  %v99_v45 = vld [vmem:[#allocation7 + $0xf8] sm:$0xff] }
  0x41   :  { %v508_v43 = vpack.c.bf16 %v80_v41, %v79_v40  ;;  %v81_v46 = vld [vmem:[#allocation7 + $0x70] sm:$0xff]  ;;  %v82_v47 = vld [vmem:[#allocation7 + $0x78] sm:$0xff]  ;;  %v480_v48 = vpack.c.bf16 %v99_v45, %v98_v44  ;;  %v64_v50 = vld [vmem:[#allocation5 + $0x8] sm:$0xff] }
  0x42   :  { %463 = vmatpush3.bf16.msra.mxu1 %v460_v16  ;;  %v512_v49 = vpack.c.bf16 %v82_v47, %v81_v46  ;;  %v60_v51 = vld [vmem:[#allocation2 + $0x8] sm:$0xff]  ;;  %v725_v52 = vld [vmem:[#allocation5 + $0x10] sm:$0xff]  ;;  %v66_v54 = vld [vmem:[#allocation5 + $0x18] sm:$0xff] }
  0x43   :  { %495 = vmatpush3.bf16.msra.mxu0 %v492_v17  ;;  %465 = vmatprep.subr.bf16.mxu1 %v464_v22  ;;  %v727_v53 = vld [vmem:[#allocation2 + $0x10] sm:$0xff]  ;;  %v62_v55 = vld [vmem:[#allocation2 + $0x18] sm:$0xff]  ;;  %v335_v58 = vld [vmem:[%s758_s3] ss:$0 sm:$0xff]  ;;  %v302_v25 = vsub.f32 %v64_v50, %v60_v51  ;;  %s641_s3 = smov [#allocation8]  }
  0x44   :  { %497 = vmatprep.subr.bf16.mxu0 %v496_v23  ;;  %v303_v33 = vsub.f32 %v725_v52, %v727_v53  ;;  %s322_s26 = sshll.u32 %s641_s3, 4  ;;  %s323_s26 = int_to_ptr.vmem [resolvable:$true] %s322_s26 }
  0x45   :  { %s608_s29 = scalar_lea.vmem %s323_s26, 512  ;;  %p613_p11 = scmp.lt.s32.totalorder %s323_s26, %s323_s26 }
  0x46   :  { %467 = vmatpush3.bf16.msra.mxu1 %v464_v22  ;;  %p609_p10 = scmp.ne.s32.totalorder %s323_s26, %s608_s29  ;;  %p614_p12 = scmp.lt.s32.totalorder %s608_s29, %s608_s29 }
  0x47   :  { %499 = vmatpush3.bf16.msra.mxu0 %v496_v23  ;;  %469 = vmatprep.subr.bf16.mxu1 %v468_v30 }
  0x48   :  { %501 = vmatprep.subr.bf16.mxu0 %v500_v31  ;;  %p615_p13 = por %p614_p12, %p613_p11 }
  0x4a   :  { %471 = vmatpush3.bf16.msra.mxu1 %v468_v30  ;;  %p616_p0 = pnand %p615_p13, %p609_p10 }
  0x4b   :  { %503 = vmatpush3.bf16.msra.mxu0 %v500_v31  ;;  %473 = vmatprep.subr.bf16.mxu1 %v472_v36  ;;  %v304_v31 = vsub.f32 %v66_v54, %v62_v55 }
  0x4c   :  { %505 = vmatprep.subr.bf16.mxu0 %v504_v37 }
  0x4e   :  { %475 = vmatpush3.bf16.msra.mxu1 %v472_v36 }
  0x4f   :  { %507 = vmatpush3.bf16.msra.mxu0 %v504_v37  ;;  %477 = vmatprep.subr.bf16.mxu1 %v476_v42 }
  0x50   :  { %509 = vmatprep.subr.bf16.mxu0 %v508_v43 }
  0x52   :  { %479 = vmatpush3.bf16.msra.mxu1 %v476_v42 }
  0x53   :  { %511 = vmatpush3.bf16.msra.mxu0 %v508_v43  ;;  %481 = vmatprep.subr.bf16.mxu1 %v480_v48 }
  0x54   :  { %513 = vmatprep.subr.bf16.mxu0 %v512_v49 }
  0x56   :  { %483 = vmatpush3.bf16.msra.mxu1 %v480_v48 }
  0x57   :  { %515 = vmatpush3.bf16.msra.mxu0 %v512_v49 }
  0x59   :  { %409 = vmatmul.mubr.f32.vlgmr.msra.gmra.mrb[0].mxu1 %v64_v50 }
  0x5a   :  { %447 = vmatmul.mubr.f32.vlgmr.msra.gmra.mrb[0].mxu0 %v60_v51  ;;  %411 = vmatprep.mubr.f32.mxu1 %v725_v52 }
  0x5b   :  { %449 = vmatprep.mubr.f32.mxu0 %v727_v53 }
  0x5d   :  { %412 = vmatmul.mubr.f32.gmra.mrb[2].mxu1 %v66_v54 }
  0x5e   :  { %450 = vmatmul.mubr.f32.gmra.mrb[2].mxu0 %v62_v55 }
 0x12c   :  { %v410_v56 = vpop.f32.mrb[0].mxu1 }
 0x12d   :  { %v448_v57 = vpop.f32.mrb[0].mxu0  ;;  %v166_v59 = vpop.f32.mrb[1].mxu1 }
 0x12e   :  { %v257_v60 = vadd.f32 %v448_v57, %v410_v56  ;;  %v251_v61 = vpop.f32.mrb[1].mxu0 }
 0x12f   :  { %v252_v62 = vadd.f32 %v251_v61, %v166_v59 }
 0x130   :  { %v278_v63 = vadd.f32 %v335_v58, %v257_v60  ;;  %v413_v0 = vpop.f32.mrb[2].mxu1 }
 0x131   :  { %v277_v1 = vadd.f32 %v335_v58, %v252_v62  ;;  %v451_v2 = vpop.f32.mrb[2].mxu0  ;;  %v176_v3 = vpop.f32.mrb[3].mxu1 }
 0x132   :  { %v282_v4 = vsub.f32 0.0, %v278_v63  ;;  %v267_v5 = vadd.f32 %v451_v2, %v413_v0  ;;  %v261_v6 = vpop.f32.mrb[3].mxu0 }
 0x133   :  { %v281_v7 = vsub.f32 0.0, %v277_v1  ;;  %v262_v8 = vadd.f32 %v261_v6, %v176_v3 }
 0x134   :  { %v287_v9 = vmul.f32 1.442695, %v282_v4  ;;  %v280_v10 = vadd.f32 %v335_v58, %v267_v5 }
 0x135   :  { %v285_v11 = vmul.f32 1.442695, %v281_v7  ;;  %v279_v12 = vadd.f32 %v335_v58, %v262_v8 }
 0x136   :  { %526 = vpow2.f32 %v287_v9  ;;  %v284_v13 = vsub.f32 0.0, %v280_v10 }
 0x137   :  { %528 = vpow2.f32 %v285_v11  ;;  %v283_v14 = vsub.f32 0.0, %v279_v12 }
 0x138   :  { %v291_v15 = vmul.f32 1.442695, %v284_v13 }
 0x139   :  { %v289_v16 = vmul.f32 1.442695, %v283_v14 }
 0x13a   :  { %530 = vpow2.f32 %v291_v15 }
 0x13b   :  { %532 = vpow2.f32 %v289_v16 }
 0x140   :  { %v527_v17 = vpop.eup %526 }
 0x141   :  { %v529_v18 = vpop.eup %528  ;;  %v294_v19 = vadd.f32 1.0, %v527_v17 }
 0x142   :  { %v293_v20 = vadd.f32 1.0, %v529_v18 }
 0x143   :  { %534 = vrcp.f32 %v294_v19 }
 0x144   :  { %v531_v21 = vpop.eup %530  ;;  %536 = vrcp.f32 %v293_v20 }
 0x145   :  { %v533_v22 = vpop.eup %532  ;;  %v296_v23 = vadd.f32 1.0, %v531_v21 }
 0x146   :  { %v295_v24 = vadd.f32 1.0, %v533_v22 }
 0x147   :  { %538 = vrcp.f32 %v296_v23 }
 0x148   :  { %540 = vrcp.f32 %v295_v24 }
 0x14d   :  { %v535_v28 = vpop.eup %534 }
 0x14e   :  { %v537_v30 = vpop.eup %536  ;;  %v306_v32 = vmul.f32 %v535_v28, %v302_v25 }
 0x14f   :  { %v305_v34 = vmul.f32 %v537_v30, %v301_v27 }
 0x150   :  { %v310_v35 = vadd.f32 %v306_v32, %v60_v51 }
 0x151   :  { %v539_v36 = vpop.eup %538  ;;  %v309_v37 = vadd.f32 %v305_v34, %v719_v26 }
 0x152   :  { %v541_v38 = vpop.eup %540  ;;  %v308_v39 = vmul.f32 %v539_v36, %v304_v31  ;;  %314 = vst [vmem:[#allocation8 + $0x8] sm:$0xff] %v310_v35 }
 0x153   :  { %v307_v40 = vmul.f32 %v541_v38, %v303_v33  ;;  %313 = vst [vmem:[#allocation8] sm:$0xff] %v309_v37 }
 0x154   :  { %v312_v29 = vadd.f32 %v308_v39, %v62_v55 }
 0x155   :  { %v311_v41 = vadd.f32 %v307_v40, %v727_v53 }
 0x156   :  { %316 = vst [vmem:[#allocation8 + $0x18] sm:$0xff] %v312_v29 }
 0x157   :  { %315 = vst [vmem:[#allocation8 + $0x10] sm:$0xff] %v311_v41 }
 0x158   :  { %619 = shalt.err (!%p616_p0)
}
 0x159   :  { %s620_s6 = scalar_lea.hbm %s759_s4, 512 }
 0x15a   :  { %p621_p1 = scmp.ne.s32.totalorder %s759_s4, %s620_s6  ;;  %p624_p2 = scmp.lt.u32.totalorder %s620_s6, %s759_s4 }
 0x15c   :  { %p626_p3 = pnand %p624_p2, %p621_p1 }
 0x15e   :  { %629 = shalt.err (!%p626_p3)
}
 0x15f   :  { %328 = dma.vmem_to_hbm [thread:$0]  %s323_s26, 512, %s759_s4, [#allocation4], %s638_s27, %s638_s27, %s639_s28  }
 0x160   :  { %634 = dma.done.wait [#allocation4], 512  }
 0x161   :  { %635 = vsyncadd [#allocation4], 4294966784 }
 0x162   :  { %332 = vsyncpa [#allocation3], 1 }
 0x163   :  { %333 = vsyncpa [#allocation6], 1 }
 0x164   :  { %334 = vsyncpa [#allocation4], 1 }

</bundles_post_ra>
